<compile_context>
chip_gen: v5e
topology: v5e:2x2
jax: 0.10.0
libtpu: 0.0.40
codegen_flags: <defaults>
</compile_context>

<pallas_src>
import jax
import jax.numpy as jnp
from jax import lax
from jax.experimental import pallas as pl
from jax.experimental.pallas import tpu as pltpu

H_PAD = 128   # padded hidden width (full vreg lane width); carrier lane = hidden_size
IN_PAD = 8    # padded input width: 4 features + ones carrier + 3 zero lanes
IN_FEATURES = 4


def _round_up(n, m):
    return ((n + m - 1) // m) * m


def _pick_row_tile(n):
    """Row tile TB: multiple of 8; >=2 grid steps when n>=16 (v7x 2 TCs);
    multiple of 128 once >=128 (lane-dense output stores); capped at 512."""
    n = max(n, 1)
    if n < 16:
        return _round_up(n, 8)
    tb = _round_up((n + 1) // 2, 8)
    if tb >= 128:
        tb = _round_up(tb, 128)
    return min(tb, 512)


def _make_mlp_kernel(tb, split):
    def kernel(x_ref, w1_ref, w23_ref, w4_ref, out_ref):
        # x_ref  : (TB, 8)        f32   [x0..x3 | 1 | 0 0 0]
        # w1_ref : (8, 128)       f32   layer-1 weight, bias on row 4, carrier re-emit
        # w23_ref: (2, 128, 128)  bf16  layers 2 & 3, bias on carrier row, carrier kept
        # w4_ref : (1, 128)       bf16  layer-4 weight as a lane row, bias at carrier lane
        # out_ref: (1, 1, TB)     f32   lane-dense output row for this batch tile
        w1 = w1_ref[...]
        w2 = w23_ref[0]
        w3 = w23_ref[1]
        w4 = w4_ref[...]

        def chain(x):
            # Layer 1 in f32 (K=8, tile-aligned, negligible FLOPs).
            h = jnp.maximum(jnp.dot(x, w1, preferred_element_type=jnp.float32), 0.0)
            # Layers 2/3 on bf16 MXU inputs; ReLU/accumulate in f32 (v5e-friendly).
            h = jnp.maximum(jnp.dot(h.astype(jnp.bfloat16), w2,
                                    preferred_element_type=jnp.float32), 0.0)
            h = jnp.maximum(jnp.dot(h.astype(jnp.bfloat16), w3,
                                    preferred_element_type=jnp.float32), 0.0)
            # Layer 4 as  w4_row @ h^T  -> (1, rows): lane-dense row, no (rows,1)
            # column store and no post-kernel slab slice.
            y = lax.dot_general(w4, h.astype(jnp.bfloat16),
                                dimension_numbers=(((1,), (1,)), ((), ())),
                                preferred_element_type=jnp.float32)
            return jnp.maximum(y, 0.0)            # (1, rows) f32

        if split:
            # Two independent sub-tiles -> two MXU chains in flight; the LLO
            # scheduler interleaves them (hides result-drain + ReLU latency).
            half = tb // 2                        # multiple of 128 when split
            y = jnp.concatenate([chain(x_ref[:half, :]), chain(x_ref[half:, :])],
                                axis=1)
        else:
            y = chain(x_ref[...])
        out_ref[...] = y.reshape(1, 1, tb).astype(out_ref.dtype)

    return kernel


def simple_network_forward(x, params):
    """x: (N, 4) float32.  params: (w1, w23, w4) from pack_params."""
    w1, w23, w4 = params
    N = x.shape[0]
    TB = _pick_row_tile(N)
    N_pad = _round_up(N, TB)
    G = N_pad // TB
    split = (TB % 256 == 0)

    # Compact augmented input: [x0..x3 | 1 | 0 0 0]  (8 lanes, not 128).
    # NOTE: rows >= N are padding and ALSO carry the ones column, so they produce
    # relu(bias)-propagated garbage in the padded output rows; that garbage is
    # sliced away below -- do not assume padded rows are zero.
    x_aug = jnp.zeros((N_pad, IN_PAD), jnp.float32)
    x_aug = x_aug.at[:N, :IN_FEATURES].set(x.astype(jnp.float32))
    x_aug = x_aug.at[:, IN_FEATURES].set(1.0)

    flops = 2 * N_pad * H_PAD * (IN_PAD + 2 * H_PAD + 1)
    bytes_accessed = (x_aug.size * 4 + w1.size * 4 + w23.size * 2 + w4.size * 2
                      + N_pad * 4)
    cost = pl.CostEstimate(flops=flops, transcendentals=0,
                           bytes_accessed=bytes_accessed)

    out = pl.pallas_call(
        _make_mlp_kernel(TB, split),
        out_shape=jax.ShapeDtypeStruct((G, 1, TB), jnp.float32),
        grid=(G,),
        in_specs=[
            pl.BlockSpec((TB, IN_PAD), lambda i: (i, 0)),          # stream batch rows
            # Weights: constant index_map -> fetched once, stay VMEM-resident.
            # TODO(synk): pipeline_mode=pl.Buffered(1) on these specs would drop the
            # never-filled second VMEM buffer for each weight operand (tiny, free win).
            pl.BlockSpec((IN_PAD, H_PAD), lambda i: (0, 0)),
            pl.BlockSpec((2, H_PAD, H_PAD), lambda i: (0, 0, 0)),
            pl.BlockSpec((1, H_PAD), lambda i: (0, 0)),
        ],
        out_specs=pl.BlockSpec((1, 1, TB), lambda i: (i, 0, 0)),   # lane-dense rows
        compiler_params=pltpu.CompilerParams(
            dimension_semantics=("parallel",),                     # shards rows on v7x
        ),
        cost_estimate=cost,
    )(x_aug, w1, w23, w4)

    # out[i, 0, t] is the prediction for row i*TB + t.
    return out.reshape(N_pad, 1)[:N]


def init_params(key, hidden_size):
    """Raw params mirroring nn.Linear init (uniform +-1/sqrt(fan_in)); biases
    zeroed as in initialise_biases().  Weights stored as (in, out)."""
    dims = [(IN_FEATURES, hidden_size), (hidden_size, hidden_size),
            (hidden_size, hidden_size), (hidden_size, 1)]
    raw = {}
    keys = jax.random.split(key, len(dims))
    for i, ((fan_in, fan_out), k) in enumerate(zip(dims, keys), start=1):
        bound = 1.0 / jnp.sqrt(jnp.float32(fan_in))
        raw[f"w{i}"] = jax.random.uniform(
            k, (fan_in, fan_out), jnp.float32, minval=-bound, maxval=bound)
        raw[f"b{i}"] = jnp.zeros((fan_out,), jnp.float32)
    return raw


def pack_params(raw, hidden_size):
    """Pack w1..w4 / b1..b4 into (w1 (8,128) f32, w23 (2,128,128) bf16, w4 (1,128) bf16).

    Biases are folded via an augmented 'ones carrier' column:
      - the input's ones lane sits at index 4 (after the 4 real features),
      - every hidden activation carries a ones lane at index H,
    so the kernel only does dot+relu chains.  Layer 4 is stored as a row so the
    kernel can emit a lane-dense (1, TB) output via  w4_row @ h^T.
    """
    H = hidden_size
    assert H < H_PAD, "ones-carrier fold requires hidden_size <= 127 (carrier at lane H)"
    C = H  # carrier lane index inside the padded hidden activation

    w1 = jnp.zeros((IN_PAD, H_PAD), jnp.float32)
    w1 = w1.at[:IN_FEATURES, :H].set(raw["w1"])
    w1 = w1.at[IN_FEATURES, :H].set(raw["b1"])     # bias row (hit by the ones lane)
    w1 = w1.at[IN_FEATURES, C].set(1.0)            # re-emit carrier into the hidden

    w23 = jnp.zeros((2, H_PAD, H_PAD), jnp.float32)
    for l, s in ((0, "2"), (1, "3")):
        w23 = w23.at[l, :H, :H].set(raw[f"w{s}"])
        w23 = w23.at[l, C, :H].set(raw[f"b{s}"])
        w23 = w23.at[l, C, C].set(1.0)

    w4 = jnp.zeros((1, H_PAD), jnp.float32)
    w4 = w4.at[0, :H].set(raw["w4"][:, 0])
    w4 = w4.at[0, C].set(raw["b4"][0])

    # bf16 weights for the big matmuls: MXU-native everywhere, halves weight DMA.
    return (w1, w23.astype(jnp.bfloat16), w4.astype(jnp.bfloat16))


def reference_forward_f32(x, p):
    hp = jax.lax.Precision.HIGHEST
    h = jax.nn.relu(jnp.dot(x, p["w1"], precision=hp) + p["b1"])
    h = jax.nn.relu(jnp.dot(h, p["w2"], precision=hp) + p["b2"])
    h = jax.nn.relu(jnp.dot(h, p["w3"], precision=hp) + p["b3"])
    h = jax.nn.relu(jnp.dot(h, p["w4"], precision=hp) + p["b4"])
    return h


def reference_forward_kernel_numerics(x, p):
    """Emulates the kernel's numerics: layer 1 in f32, layers 2-4 with bf16 MXU
    operands + f32 accumulation, biases rounded to bf16 (they live in the packed
    bf16 weight as the carrier row)."""
    bf, f32 = jnp.bfloat16, jnp.float32
    hp = jax.lax.Precision.HIGHEST
    h = jax.nn.relu(jnp.dot(x.astype(f32), p["w1"], precision=hp) + p["b1"])

    def layer(h, w, b):
        acc = jnp.dot(h.astype(bf), w.astype(bf), preferred_element_type=f32)
        return jax.nn.relu(acc + b.astype(bf).astype(f32))

    h = layer(h, p["w2"], p["b2"])
    h = layer(h, p["w3"], p["b3"])
    h = layer(h, p["w4"], p["b4"])
    return h


if __name__ == "__main__":
    hidden_size = 50   # module default
    batch = 8

    key = jax.random.PRNGKey(0)
    k_params, k_pts, k_bias, k_big = jax.random.split(key, 4)
    raw = init_params(k_params, hidden_size)
    params = pack_params(raw, hidden_size)

    # Inputs matching set_data(): [x, y, ctx1, ctx2], points in [-1, 1],
    # one-hot task context in the last two columns.
    pts = jax.random.uniform(k_pts, (batch, 2), jnp.float32, minval=-1.0, maxval=1.0)
    ctx = jnp.concatenate(
        [jnp.ones((batch, 1), jnp.float32), jnp.zeros((batch, 1), jnp.float32)], axis=1)
    x = jnp.concatenate([pts, ctx], axis=1)   # (batch, 4)

    out = jax.block_until_ready(simple_network_forward(x, params))
    assert out.shape == (batch, 1)
    assert jnp.allclose(out, reference_forward_kernel_numerics(x, raw),
                        atol=5e-3, rtol=5e-3), "mismatch vs kernel-numerics reference"
    assert jnp.allclose(out, reference_forward_f32(x, raw),
                        atol=3e-2, rtol=3e-2), "mismatch vs f32 reference"

    # Exercise the carrier bias-fold with non-zero biases.
    bkeys = jax.random.split(k_bias, 4)
    raw_b = dict(raw)
    for i, bk in enumerate(bkeys, start=1):
        raw_b[f"b{i}"] = 0.1 * jax.random.normal(bk, raw[f"b{i}"].shape, jnp.float32)
    params_b = pack_params(raw_b, hidden_size)
    out_b = jax.block_until_ready(simple_network_forward(x, params_b))
    assert jnp.allclose(out_b, reference_forward_kernel_numerics(x, raw_b),
                        atol=5e-3, rtol=5e-3), "mismatch vs kernel-numerics ref (biases)"
    assert jnp.allclose(out_b, reference_forward_f32(x, raw_b),
                        atol=3e-2, rtol=3e-2), "mismatch vs f32 ref (biases)"

    # Large batch (the module's N_train=1000): TB=512, 2 grid steps (both v7x
    # TensorCores active), two-chain split path, lane-dense output rows.
    x_big = jax.random.uniform(k_big, (1000, 4), jnp.float32, minval=-1.0, maxval=1.0)
    out_big = jax.block_until_ready(simple_network_forward(x_big, params_b))
    assert out_big.shape == (1000, 1)
    assert jnp.allclose(out_big, reference_forward_kernel_numerics(x_big, raw_b),
                        atol=5e-3, rtol=5e-3), "mismatch vs kernel-numerics ref (N=1000)"

    print("KERNEL_OK")
</pallas_src>

<mosaic_0001>
module attributes {stable_mosaic.version = 11 : i64} {
  func.func @kernel(%arg0: i32, %arg1: memref<8x8xf32, #tpu.memory_space<vmem>>, %arg2: memref<8x128xf32, #tpu.memory_space<vmem>>, %arg3: memref<2x128x128xbf16, #tpu.memory_space<vmem>>, %arg4: memref<1x128xbf16, #tpu.memory_space<vmem>>, %arg5: memref<1x1x8xf32, #tpu.memory_space<vmem>>) attributes {dimension_semantics = [#tpu.dimension_semantics<parallel>], iteration_bounds = array<i64: 1>, scalar_prefetch = 0 : i64, scratch_operands = 0 : i64, tpu.core_type = #tpu.core_type<tc>, window_params = [{transform_indices = @transform_0, window_bounds = array<i64: 8, 8>}, {pipeline_mode = #tpu.pipeline_mode<synchronous>, transform_indices = @transform_1, window_bounds = array<i64: 8, 128>}, {pipeline_mode = #tpu.pipeline_mode<synchronous>, transform_indices = @transform_2, window_bounds = array<i64: 2, 128, 128>}, {pipeline_mode = #tpu.pipeline_mode<synchronous>, transform_indices = @transform_3, window_bounds = array<i64: 1, 128>}, {transform_indices = @transform_4, window_bounds = array<i64: 1, 1, 8>}]} {
    %c0 = arith.constant 0 : index
    %c0_0 = arith.constant 0 : index
    %0 = vector.load %arg2[%c0, %c0_0] : memref<8x128xf32, #tpu.memory_space<vmem>>, vector<8x128xf32>
    %c0_1 = arith.constant 0 : index
    %c0_2 = arith.constant 0 : index
    %c0_3 = arith.constant 0 : index
    %1 = vector.load %arg3[%c0_1, %c0_2, %c0_3] : memref<2x128x128xbf16, #tpu.memory_space<vmem>>, vector<1x128x128xbf16>
    %2 = vector.shape_cast %1 : vector<1x128x128xbf16> to vector<128x128xbf16>
    %c1 = arith.constant 1 : index
    %c0_4 = arith.constant 0 : index
    %c0_5 = arith.constant 0 : index
    %3 = vector.load %arg3[%c1, %c0_4, %c0_5] : memref<2x128x128xbf16, #tpu.memory_space<vmem>>, vector<1x128x128xbf16>
    %4 = vector.shape_cast %3 : vector<1x128x128xbf16> to vector<128x128xbf16>
    %c0_6 = arith.constant 0 : index
    %c0_7 = arith.constant 0 : index
    %5 = vector.load %arg4[%c0_6, %c0_7] : memref<1x128xbf16, #tpu.memory_space<vmem>>, vector<1x128xbf16>
    %c0_8 = arith.constant 0 : index
    %c0_9 = arith.constant 0 : index
    %6 = vector.load %arg1[%c0_8, %c0_9] : memref<8x8xf32, #tpu.memory_space<vmem>>, vector<8x8xf32>
    %cst = arith.constant dense<0.000000e+00> : vector<8x128xf32>
    %7 = tpu.matmul %6, %0, %cst {dimension_numbers = #tpu.dot_dimension_numbers<[1], [0], [0], [1], [0, 0, 1, 1], [], []>} : vector<8x8xf32>, vector<8x128xf32>, vector<8x128xf32> -> vector<8x128xf32>
    %cst_10 = arith.constant 0.000000e+00 : f32
    %8 = vector.broadcast %cst_10 : f32 to vector<8x128xf32>
    %9 = arith.maximumf %7, %8 : vector<8x128xf32>
    %10 = arith.truncf %9 : vector<8x128xf32> to vector<8x128xbf16>
    %cst_11 = arith.constant dense<0.000000e+00> : vector<8x128xf32>
    %11 = tpu.matmul %10, %2, %cst_11 {dimension_numbers = #tpu.dot_dimension_numbers<[1], [0], [0], [1], [0, 0, 1, 1], [], []>} : vector<8x128xbf16>, vector<128x128xbf16>, vector<8x128xf32> -> vector<8x128xf32>
    %cst_12 = arith.constant 0.000000e+00 : f32
    %12 = vector.broadcast %cst_12 : f32 to vector<8x128xf32>
    %13 = arith.maximumf %11, %12 : vector<8x128xf32>
    %14 = arith.truncf %13 : vector<8x128xf32> to vector<8x128xbf16>
    %cst_13 = arith.constant dense<0.000000e+00> : vector<8x128xf32>
    %15 = tpu.matmul %14, %4, %cst_13 {dimension_numbers = #tpu.dot_dimension_numbers<[1], [0], [0], [1], [0, 0, 1, 1], [], []>} : vector<8x128xbf16>, vector<128x128xbf16>, vector<8x128xf32> -> vector<8x128xf32>
    %cst_14 = arith.constant 0.000000e+00 : f32
    %16 = vector.broadcast %cst_14 : f32 to vector<8x128xf32>
    %17 = arith.maximumf %15, %16 : vector<8x128xf32>
    %18 = arith.truncf %17 : vector<8x128xf32> to vector<8x128xbf16>
    %cst_15 = arith.constant dense<0.000000e+00> : vector<1x8xf32>
    %19 = tpu.matmul %5, %18, %cst_15 {dimension_numbers = #tpu.dot_dimension_numbers<[1], [1], [0], [0], [0, 0, 1, 0], [], []>} : vector<1x128xbf16>, vector<8x128xbf16>, vector<1x8xf32> -> vector<1x8xf32>
    %cst_16 = arith.constant 0.000000e+00 : f32
    %20 = vector.broadcast %cst_16 : f32 to vector<1x8xf32>
    %21 = arith.maximumf %19, %20 : vector<1x8xf32>
    %22 = vector.shape_cast %21 : vector<1x8xf32> to vector<1x1x8xf32>
    %c0_17 = arith.constant 0 : index
    %c0_18 = arith.constant 0 : index
    %c0_19 = arith.constant 0 : index
    %23 = vector.load %arg5[%c0_17, %c0_18, %c0_19] : memref<1x1x8xf32, #tpu.memory_space<vmem>>, vector<1x1x8xf32>
    tpu.vector_store %arg5[%c0_17, %c0_18, %c0_19], %22 {strides = array<i32>} : memref<1x1x8xf32, #tpu.memory_space<vmem>>, vector<1x1x8xf32>,
    return
  }
  func.func @transform_0(%arg0: i32) -> (i32, i32) {
    %c0_i32 = arith.constant 0 : i32
    %c0_i32_0 = arith.constant 0 : i32
    return %arg0, %c0_i32 : i32, i32
  }
  func.func @transform_1(%arg0: i32) -> (i32, i32) {
    %c0_i32 = arith.constant 0 : i32
    %c0_i32_0 = arith.constant 0 : i32
    %c0_i32_1 = arith.constant 0 : i32
    return %c0_i32, %c0_i32_0 : i32, i32
  }
  func.func @transform_2(%arg0: i32) -> (i32, i32, i32) {
    %c0_i32 = arith.constant 0 : i32
    %c0_i32_0 = arith.constant 0 : i32
    %c0_i32_1 = arith.constant 0 : i32
    %c0_i32_2 = arith.constant 0 : i32
    return %c0_i32, %c0_i32_0, %c0_i32_1 : i32, i32, i32
  }
  func.func @transform_3(%arg0: i32) -> (i32, i32) {
    %c0_i32 = arith.constant 0 : i32
    %c0_i32_0 = arith.constant 0 : i32
    %c0_i32_1 = arith.constant 0 : i32
    return %c0_i32, %c0_i32_0 : i32, i32
  }
  func.func @transform_4(%arg0: i32) -> (i32, i32, i32) {
    %c0_i32 = arith.constant 0 : i32
    %c0_i32_0 = arith.constant 0 : i32
    %c0_i32_1 = arith.constant 0 : i32
    return %arg0, %c0_i32, %c0_i32_0 : i32, i32, i32
  }
}

</mosaic_0001>

<bundles_post_ra>
// kernel: tpu_custom_call.1
= control target key start
LH: loop header
LB: loop body
LE: loop exit
PB: predicated region body
PF: predicated region fallthrough
CT: control target
= control target key end

     0   :  { %9 = vsyncpa [#allocation3], 0  ;;  %s519_s0 = inlined_call_operand.hbm [shape: f32[8,8], index: 0, kind: input, shape index: {}]   ;;  %s520_s1 = inlined_call_operand.hbm [shape: f32[8,128], index: 1, kind: input, shape index: {}]   ;;  %s521_s2 = inlined_call_operand.hbm [shape: bf16[2,128,128], index: 2, kind: input, shape index: {}]   ;;  %s522_s3 = inlined_call_operand.vmem [shape: bf16[1,128], index: 3, kind: input, shape index: {}]   ;;  %s523_s4 = inlined_call_operand.hbm [shape: f32[1,1,8], index: 4, kind: output, shape index: {}]  }
   0x1   :  { %10 = vsyncpa [#allocation6], 0  ;;  %s28_s17 = sshll.u32 %s520_s1, 4  ;;  %s29_s17 = int_to_ptr.hbm [resolvable:$true] %s28_s17 }
   0x2   :  { %11 = vsyncpa [#allocation4], 0  ;;  %s473_s18 = smov [#allocation5]   ;;  %s17_s22 = sshll.u32 %s519_s0, 4  ;;  %s18_s22 = int_to_ptr.hbm [resolvable:$true] %s17_s22 }
   0x3   :  { %s30_s19 = sshll.u32 %s473_s18, 4  ;;  %s474_s23 = smov [#allocation2]   ;;  %s31_s19 = int_to_ptr.vmem [resolvable:$true] %s30_s19 }
   0x4   :  { %33 = dma.hbm_to_vmem [thread:$0]  %s29_s17, 128, %s31_s19, [#allocation6]  }
   0x5   :  { %s19_s24 = sshll.u32 %s474_s23, 4  ;;  %s38_s27 = sshll.u32 %s521_s2, 4  ;;  %s20_s24 = int_to_ptr.vmem [resolvable:$true] %s19_s24  ;;  %s39_s27 = int_to_ptr.hbm [resolvable:$true] %s38_s27 }
   0x6   :  { %22 = dma.hbm_to_vmem [thread:$0]  %s18_s22, 128, %s20_s24, [#allocation3]  }
   0x7   :  { %s475_s1 = smov [#allocation7]   ;;  %s476_s29 = smov 64  }
   0x8   :  { %s40_s28 = sshll.u32 %s475_s1, 4  ;;  %s477_s30 = smov 4   ;;  %s41_s28 = int_to_ptr.vmem [resolvable:$true] %s40_s28 }
   0x9   :  { %46 = dma.hbm_to_vmem [thread:$0]  %s39_s27, 2048, %s41_s28, [#allocation6], %s476_s29, %s476_s29, %s477_s30  }
   0xa   :  { %467 = dma.done.wait [#allocation3], 128  }
   0xb   :  { %468 = vsyncadd [#allocation3], 4294967168 }
   0xc   :  { %469 = dma.done.wait [#allocation6], 2176  }
   0xd   :  { %470 = vsyncadd [#allocation6], 4294965120  ;;  %vm98_vm0 = vcmask 64512   ;;  %v62_v0 = vld [vmem:[#allocation5] sm:$0xff]  ;;  %v97_v1 = vld [vmem:[#allocation2] sm:$0xff]  ;;  %s478_s5 = smov [#allocation8]  }
   0xe   :  { %v356_v2 = vld [vmem:[#allocation7 + $0x38] sm:$0xff]  ;;  %117 = vmatpush.msra.mxu0 %v62_v0  ;;  %v355_v3 = vld [vmem:[#allocation7 + $0x30] sm:$0xff]  ;;  %v354_v4 = vld [vmem:[#allocation7 + $0x28] sm:$0xff]  ;;  %s271_s6 = sshll.u32 %s478_s5, 4  ;;  %s273_s9 = sshll.u32 %s523_s4, 4  ;;  %vm264_vm1 = vcmask 57344   ;;  %s272_s6 = int_to_ptr.vmem [resolvable:$true] %s271_s6  ;;  %s274_s9 = int_to_ptr.hbm [resolvable:$true] %s273_s9 }
   0xf   :  { %284 = vmatmul.msk.f32.vlgmr.msra.gmra.mxu0 %vm98_vm0, %v97_v1  ;;  %172 = vmatpush.bf16.msra.mxu1 %v356_v2  ;;  %v353_v5 = vld [vmem:[#allocation7 + $0x20] sm:$0xff]  ;;  %v352_v6 = vld [vmem:[#allocation7 + $0x18] sm:$0xff]  ;;  %v351_v7 = vld [vmem:[#allocation7 + $0x10] sm:$0xff] }
  0x10   :  { %v350_v8 = vld [vmem:[#allocation7 + $0x8] sm:$0xff]  ;;  %v349_v9 = vld [vmem:[#allocation7] sm:$0xff]  ;;  %v364_v10 = vld [vmem:[#allocation7 + $0x78] sm:$0xff] }
  0x11   :  { %235 = vmatpush.bf16.msra.mxu2 %v364_v10  ;;  %v363_v11 = vld [vmem:[#allocation7 + $0x70] sm:$0xff]  ;;  %v362_v12 = vld [vmem:[#allocation7 + $0x68] sm:$0xff]  ;;  %v361_v13 = vld [vmem:[#allocation7 + $0x60] sm:$0xff] }
  0x12   :  { %v360_v14 = vld [vmem:[#allocation7 + $0x58] sm:$0xff]  ;;  %v359_v15 = vld [vmem:[#allocation7 + $0x50] sm:$0xff]  ;;  %v358_v16 = vld [vmem:[#allocation7 + $0x48] sm:$0xff] }
  0x13   :  { %173 = vmatpush.bf16.msra.mxu1 %v355_v3  ;;  %v357_v20 = vld [vmem:[#allocation7 + $0x40] sm:$0xff]  ;;  %v96_v29 = vld [vmem:[%s522_s3] sm:$0x1] }
  0x15   :  { %236 = vmatpush.bf16.msra.mxu2 %v363_v11 }
  0x17   :  { %174 = vmatpush.bf16.msra.mxu1 %v354_v4 }
  0x19   :  { %237 = vmatpush.bf16.msra.mxu2 %v362_v12 }
  0x1b   :  { %175 = vmatpush.bf16.msra.mxu1 %v353_v5 }
  0x1d   :  { %238 = vmatpush.bf16.msra.mxu2 %v361_v13 }
  0x1f   :  { %176 = vmatpush.bf16.msra.mxu1 %v352_v6 }
  0x21   :  { %239 = vmatpush.bf16.msra.mxu2 %v360_v14 }
  0x23   :  { %177 = vmatpush.bf16.msra.mxu1 %v351_v7 }
  0x25   :  { %240 = vmatpush.bf16.msra.mxu2 %v359_v15 }
  0x27   :  { %178 = vmatpush.bf16.msra.mxu1 %v350_v8 }
  0x29   :  { %241 = vmatpush.bf16.msra.mxu2 %v358_v16 }
  0x2b   :  { %179 = vmatpush.bf16.msra.mxu1 %v349_v9 }
  0x2d   :  { %242 = vmatpush.bf16.msra.mxu2 %v357_v20 }
  0x8c   :  { %v119_v17 = vpop.f32.mrf.mxu0 }
  0x8d   :  { %v122_v18 = vmax.f32 %v119_v17, 0.0 }
  0x8f   :  { %v123_v19 = vpack.c.bf16 %v122_v18, %v122_v18 }
  0x91   :  { %180 = vmatmul.bf16.vlgmr.msra.gmra.mxu1 %v123_v19 }
 0x10e   :  { %v181_v21 = vpop.f32.mrf.mxu1 }
 0x10f   :  { %v185_v22 = vmax.f32 %v181_v21, 0.0 }
 0x111   :  { %v186_v23 = vpack.c.bf16 %v185_v22, %v185_v22 }
 0x113   :  { %243 = vmatmul.bf16.vlgmr.msra.gmra.mxu2 %v186_v23 }
 0x116   :  { %v183_v24 = vpop.f32.mrf.mxu1 }
 0x196   :  { %v244_v25 = vpop.f32.mrf.mxu2 }
 0x197   :  { %v248_v26 = vmax.f32 %v244_v25, 0.0 }
 0x199   :  { %v249_v27 = vpack.c.bf16 %v248_v26, %v248_v26 }
 0x19b   :  { %257 = vmatpush.bf16.xpose.msra.mxu3 %v249_v27 }
 0x19e   :  { %v246_v28 = vpop.f32.mrf.mxu2 }
 0x1a2   :  { %258 = vmatmul.bf16.vlgmr.msra.gmra.mxu3 %v96_v29 }
 0x225   :  { %v259_v30 = vpop.f32.mrf.mxu3 }
 0x226   :  { %v263_v31 = vmax.f32 %v259_v30, 0.0 }
 0x228   :  { %265 = vst.msk [vmem:[#allocation8] sm:$0x1] %vm264_vm1, %v263_v31 }
 0x229   :  { %276 = dma.vmem_to_hbm [thread:$0]  %s272_s6, 16, %s274_s9, [#allocation4]  }
 0x22d   :  { %v261_v32 = vpop.f32.mrf.mxu3 }
 0x22e   :  { %471 = dma.done.wait [#allocation4], 16  }
 0x22f   :  { %472 = vsyncadd [#allocation4], 4294967280 }
 0x230   :  { %281 = vsyncpa [#allocation3], 1 }
 0x231   :  { %282 = vsyncpa [#allocation6], 1 }
 0x232   :  { %283 = vsyncpa [#allocation4], 1 }

</bundles_post_ra>
